<compile_context>
chip_gen: v6e
topology: v6e:2x2x1
jax: 0.10.0
libtpu: 0.0.40
codegen_flags: <defaults>
</compile_context>

<pallas_src>
import functools
import math

import jax
import jax.numpy as jnp
from jax.experimental import pallas as pl
from jax.experimental.pallas import tpu as pltpu


def _round_up(x, m):
    return (x + m - 1) // m * m


def _pad2(a, rows, cols):
    return jnp.pad(a, ((0, rows - a.shape[0]), (0, cols - a.shape[1])))


def _masked_log_softmax(z, valid_cols):
    """log_softmax over the last axis, ignoring lane-padding columns."""
    if valid_cols < z.shape[-1]:
        col = jax.lax.broadcasted_iota(jnp.int32, z.shape, 1)
        z = jnp.where(col < valid_cols, z, -1e30)
    m = jnp.max(z, axis=-1, keepdims=True)
    s = z - m
    lse = jnp.log(jnp.sum(jnp.exp(s), axis=-1, keepdims=True))
    return s - lse


# ---------------------------------------------------------------------------
# Stage A: support = x @ W    (row-tiled; x read once, W resident)
# ---------------------------------------------------------------------------
def _support_kernel(x_ref, w_ref, o_ref):
    o_ref[...] = jnp.dot(x_ref[...], w_ref[...],
                         preferred_element_type=jnp.float32).astype(o_ref.dtype)


def _support_matmul(x_p, w_p, *, tm, out_dtype):
    n_p, fin_p = x_p.shape
    fout_p = w_p.shape[1]
    dsize = jnp.dtype(x_p.dtype).itemsize
    cost = pl.CostEstimate(
        flops=2 * n_p * fin_p * fout_p,
        transcendentals=0,
        bytes_accessed=dsize * (x_p.size + w_p.size)
        + jnp.dtype(out_dtype).itemsize * n_p * fout_p)
    return pl.pallas_call(
        _support_kernel,
        out_shape=jax.ShapeDtypeStruct((n_p, fout_p), out_dtype),
        grid_spec=pltpu.PrefetchScalarGridSpec(
            num_scalar_prefetch=0,
            grid=(n_p // tm,),
            in_specs=[
                pl.BlockSpec((tm, fin_p), lambda i: (i, 0)),       # x row tile
                pl.BlockSpec((fin_p, fout_p), lambda i: (0, 0)),   # W resident
            ],
            out_specs=pl.BlockSpec((tm, fout_p), lambda i: (i, 0)),
        ),
        compiler_params=pltpu.CompilerParams(
            dimension_semantics=("parallel",)),
        cost_estimate=cost,
    )(x_p, w_p)


# ---------------------------------------------------------------------------
# Stage B: out = act(adj @ support + b)   (row tile tm, adj k-tile tk)
# ---------------------------------------------------------------------------
def _aggregate_kernel(adj_ref, s_ref, b_ref, out_ref, acc_ref,
                      *, activation, valid_cols):
    k = pl.program_id(1)

    @pl.when(k == 0)
    def _():
        acc_ref[...] = jnp.zeros_like(acc_ref)

    acc_ref[...] += jnp.dot(adj_ref[...], s_ref[...],
                            preferred_element_type=jnp.float32)

    @pl.when(k == pl.num_programs(1) - 1)
    def _():
        z = acc_ref[...] + b_ref[...].astype(jnp.float32)   # bias once, finalize
        if activation == "relu":
            z = jnp.maximum(z, 0.0)
        elif activation == "log_softmax":
            z = _masked_log_softmax(z, valid_cols)
        out_ref[...] = z.astype(out_ref.dtype)


def _aggregate(adj_p, support_p, b_p, *, tm, tk, activation, valid_cols,
               out_dtype):
    n_p = adj_p.shape[0]
    fout_p = support_p.shape[1]
    n_row, n_k = n_p // tm, n_p // tk

    dsize = jnp.dtype(adj_p.dtype).itemsize
    cost = pl.CostEstimate(
        flops=2 * n_p * n_p * fout_p,
        transcendentals=(n_p * fout_p if activation == "log_softmax" else 0),
        bytes_accessed=dsize * adj_p.size
        + dsize * n_row * support_p.size      # support streamed per row tile
        + 4 * b_p.size
        + jnp.dtype(out_dtype).itemsize * n_p * fout_p)

    kernel = functools.partial(_aggregate_kernel, activation=activation,
                               valid_cols=valid_cols)
    return pl.pallas_call(
        kernel,
        out_shape=jax.ShapeDtypeStruct((n_p, fout_p), out_dtype),
        grid_spec=pltpu.PrefetchScalarGridSpec(
            num_scalar_prefetch=0,
            grid=(n_row, n_k),
            in_specs=[
                pl.BlockSpec((tm, tk), lambda i, k: (i, k)),          # adj tile
                pl.BlockSpec((tk, fout_p), lambda i, k: (k, 0)),      # support tile
                pl.BlockSpec((1, fout_p), lambda i, k: (0, 0)),       # bias resident
            ],
            out_specs=pl.BlockSpec((tm, fout_p), lambda i, k: (i, 0)),
            scratch_shapes=[pltpu.VMEM((tm, fout_p), jnp.float32)],
        ),
        compiler_params=pltpu.CompilerParams(
            dimension_semantics=("parallel", "arbitrary")),
        cost_estimate=cost,
    )(adj_p, support_p, b_p)


# ---------------------------------------------------------------------------
# Fused single-tile path for tiny graphs (one pallas_call, no HBM round-trip)
# ---------------------------------------------------------------------------
def _fused_gcn_kernel(x_ref, adj_ref, w1_ref, b1_ref, w2_ref, b2_ref, out_ref,
                      *, valid_cols):
    adj = adj_ref[...]
    s1 = jnp.dot(x_ref[...], w1_ref[...], preferred_element_type=jnp.float32)
    h = jnp.dot(adj, s1.astype(adj.dtype), preferred_element_type=jnp.float32)
    h = jnp.maximum(h + b1_ref[...].astype(jnp.float32), 0.0)
    # TODO(synk): training-mode dropout would mask h here via pltpu.prng_seed +
    # pltpu.prng_random_bits; inference (training=False) -> identity.
    s2 = jnp.dot(h.astype(w2_ref.dtype), w2_ref[...],
                 preferred_element_type=jnp.float32)
    z = jnp.dot(adj, s2.astype(adj.dtype), preferred_element_type=jnp.float32)
    z = z + b2_ref[...].astype(jnp.float32)
    out_ref[...] = _masked_log_softmax(z, valid_cols).astype(out_ref.dtype)


def _fused_gcn(x_p, adj_p, w1_p, b1_p, w2_p, b2_p, *, valid_cols):
    n_p = x_p.shape[0]
    c_p = w2_p.shape[1]
    kernel = functools.partial(_fused_gcn_kernel, valid_cols=valid_cols)
    # No grid / BlockSpecs: whole (small, padded) arrays are placed in VMEM.
    return pl.pallas_call(
        kernel,
        out_shape=jax.ShapeDtypeStruct((n_p, c_p), jnp.float32),
    )(x_p, adj_p, w1_p, b1_p, w2_p, b2_p)


# ---------------------------------------------------------------------------
# Forward pass
# ---------------------------------------------------------------------------
@functools.partial(jax.jit, static_argnames=("compute_dtype",))
def gcn_forward(x, adj, w1, b1, w2, b2, compute_dtype=jnp.bfloat16):
    n, nfeat = x.shape
    nhid = w1.shape[1]
    nclass = w2.shape[1]

    f_p = _round_up(nfeat, 128)
    h_p = _round_up(nhid, 128)
    c_p = _round_up(nclass, 128)

    # Tile choice: decouple the row tile tm (accumulator height) from the adj
    # k-tile tk (streaming width).  Keep >=2 row tiles whenever possible so the
    # "parallel" row axis can split across v7x's two TensorCores.
    if n <= 256:
        n_p = _round_up(n, 128)
        tm, tk = 128, n_p
    else:
        n_p = _round_up(n, 512)
        tm, tk = 256, 512

    cd = compute_dtype
    x_p = _pad2(x.astype(cd), n_p, f_p)
    adj_p = _pad2(adj.astype(cd), n_p, n_p)
    w1_p = _pad2(w1.astype(cd), f_p, h_p)
    w2_p = _pad2(w2.astype(cd), h_p, c_p)
    b1_p = _pad2(b1.astype(jnp.float32), 1, h_p)
    b2_p = _pad2(b2.astype(jnp.float32), 1, c_p)

    # Tiny single-tile graphs: one fused call (grid 1x1 regime where per-call
    # overhead dominates).  Gate on a rough VMEM budget for the resident W1.
    if n_p <= 128 and f_p * h_p <= (1 << 21):
        z = _fused_gcn(x_p, adj_p, w1_p, b1_p, w2_p, b2_p, valid_cols=nclass)
        return z[:n, :nclass]

    # ---- gc1 + ReLU  (lane-dense [n_p, h_p] hidden activations) ----
    s1 = _support_matmul(x_p, w1_p, tm=tm, out_dtype=cd)
    h = _aggregate(adj_p, s1, b1_p, tm=tm, tk=tk,
                   activation="relu", valid_cols=h_p, out_dtype=cd)

    # ---- dropout: inference (training=False) -> identity ----
    # TODO(synk): training-mode dropout would mask h here via pltpu.prng_seed +
    # pltpu.prng_random_bits inside the aggregate finalize.

    # ---- gc2 + log_softmax  (lane-dense [n_p, c_p] output slab) ----
    s2 = _support_matmul(h, w2_p, tm=tm, out_dtype=cd)
    z = _aggregate(adj_p, s2, b2_p, tm=tm, tk=tk,
                   activation="log_softmax", valid_cols=nclass,
                   out_dtype=jnp.float32)

    return z[:n, :nclass]


# ---------------------------------------------------------------------------
# Reference / test harness
# ---------------------------------------------------------------------------
def init_gc_params(key, in_features, out_features):
    """Mimic GraphConvolution.reset_parameters: U(-1/sqrt(out), 1/sqrt(out))."""
    kw, kb = jax.random.split(key)
    stdv = 1.0 / math.sqrt(out_features)
    w = jax.random.uniform(
        kw, (in_features, out_features), jnp.float32, minval=-stdv, maxval=stdv)
    b = jax.random.uniform(
        kb, (1, out_features), jnp.float32, minval=-stdv, maxval=stdv)
    return w, b


def reference_gcn(x, adj, w1, b1, w2, b2):
    h = jnp.maximum(adj @ (x @ w1) + b1, 0.0)
    z = adj @ (h @ w2) + b2
    return jax.nn.log_softmax(z, axis=1)


def _make_problem(key, n_nodes, nfeat, nhid, nclass):
    kx, kadj, k1, k2 = jax.random.split(key, 4)
    x = jax.random.normal(kx, (n_nodes, nfeat), jnp.float32)
    # Symmetric row-normalized adjacency with self-loops (deterministic).
    a = (jax.random.uniform(kadj, (n_nodes, n_nodes)) > 0.5).astype(jnp.float32)
    a = jnp.maximum(a, a.T) + jnp.eye(n_nodes, dtype=jnp.float32)
    adj = a / jnp.sum(a, axis=1, keepdims=True)
    w1, b1 = init_gc_params(k1, nfeat, nhid)
    w2, b2 = init_gc_params(k2, nhid, nclass)
    return x, adj, w1, b1, w2, b2


if __name__ == "__main__":
    key = jax.random.PRNGKey(0)
    keys = jax.random.split(key, 3)

    cases = [
        dict(n_nodes=8, nfeat=16, nhid=32, nclass=4),      # fused single-tile path
        dict(n_nodes=200, nfeat=48, nhid=96, nclass=10),   # tiled: 2 row tiles, 1 k tile
        dict(n_nodes=600, nfeat=300, nhid=64, nclass=7),   # tiled: multi-k accumulation
    ]

    for k, cfg in zip(keys, cases):
        args = _make_problem(k, **cfg)
        ref = reference_gcn(*args)

        # f32 debug path: validates the kernel structure against the reference.
        out32 = jax.block_until_ready(
            gcn_forward(*args, compute_dtype=jnp.float32))
        assert out32.shape == (cfg["n_nodes"], cfg["nclass"])
        assert jnp.allclose(out32, ref, atol=1e-3, rtol=1e-3), f"f32 mismatch {cfg}"

        # Default bf16 path (performance): looser tolerance vs f32 reference.
        out16 = jax.block_until_ready(gcn_forward(*args))
        assert out16.shape == (cfg["n_nodes"], cfg["nclass"])
        assert jnp.allclose(out16, ref, atol=5e-2, rtol=5e-2), f"bf16 mismatch {cfg}"

    print("KERNEL_OK")
</pallas_src>

<mosaic_0001>
module attributes {stable_mosaic.version = 11 : i64} {
  func.func @_fused_gcn_kernel(%arg0: memref<128x128xf32, #tpu.memory_space<vmem>>, %arg1: memref<128x128xf32, #tpu.memory_space<vmem>>, %arg2: memref<128x128xf32, #tpu.memory_space<vmem>>, %arg3: memref<1x128xf32, #tpu.memory_space<vmem>>, %arg4: memref<128x128xf32, #tpu.memory_space<vmem>>, %arg5: memref<1x128xf32, #tpu.memory_space<vmem>>, %arg6: memref<128x128xf32, #tpu.memory_space<vmem>>) attributes {dimension_semantics = [], scalar_prefetch = 0 : i64, scratch_operands = 0 : i64, tpu.core_type = #tpu.core_type<tc>} {
    %c0 = arith.constant 0 : index
    %c0_0 = arith.constant 0 : index
    %0 = vector.load %arg1[%c0, %c0_0] : memref<128x128xf32, #tpu.memory_space<vmem>>, vector<128x128xf32>
    %c0_1 = arith.constant 0 : index
    %c0_2 = arith.constant 0 : index
    %1 = vector.load %arg0[%c0_1, %c0_2] : memref<128x128xf32, #tpu.memory_space<vmem>>, vector<128x128xf32>
    %c0_3 = arith.constant 0 : index
    %c0_4 = arith.constant 0 : index
    %2 = vector.load %arg2[%c0_3, %c0_4] : memref<128x128xf32, #tpu.memory_space<vmem>>, vector<128x128xf32>
    %cst = arith.constant dense<0.000000e+00> : vector<128x128xf32>
    %3 = tpu.matmul %1, %2, %cst {dimension_numbers = #tpu.dot_dimension_numbers<[1], [0], [0], [1], [0, 0, 1, 1], [], []>} : vector<128x128xf32>, vector<128x128xf32>, vector<128x128xf32> -> vector<128x128xf32>
    %cst_5 = arith.constant dense<0.000000e+00> : vector<128x128xf32>
    %4 = tpu.matmul %0, %3, %cst_5 {dimension_numbers = #tpu.dot_dimension_numbers<[1], [0], [0], [1], [0, 0, 1, 1], [], []>} : vector<128x128xf32>, vector<128x128xf32>, vector<128x128xf32> -> vector<128x128xf32>
    %c0_6 = arith.constant 0 : index
    %c0_7 = arith.constant 0 : index
    %5 = vector.load %arg3[%c0_6, %c0_7] : memref<1x128xf32, #tpu.memory_space<vmem>>, vector<1x128xf32>
    %6 = vector.broadcast %5 : vector<1x128xf32> to vector<128x128xf32>
    %7 = arith.addf %4, %6 : vector<128x128xf32>
    %cst_8 = arith.constant 0.000000e+00 : f32
    %8 = vector.broadcast %cst_8 : f32 to vector<128x128xf32>
    %9 = arith.maximumf %7, %8 : vector<128x128xf32>
    %c0_9 = arith.constant 0 : index
    %c0_10 = arith.constant 0 : index
    %10 = vector.load %arg4[%c0_9, %c0_10] : memref<128x128xf32, #tpu.memory_space<vmem>>, vector<128x128xf32>
    %cst_11 = arith.constant dense<0.000000e+00> : vector<128x128xf32>
    %11 = tpu.matmul %9, %10, %cst_11 {dimension_numbers = #tpu.dot_dimension_numbers<[1], [0], [0], [1], [0, 0, 1, 1], [], []>} : vector<128x128xf32>, vector<128x128xf32>, vector<128x128xf32> -> vector<128x128xf32>
    %cst_12 = arith.constant dense<0.000000e+00> : vector<128x128xf32>
    %12 = tpu.matmul %0, %11, %cst_12 {dimension_numbers = #tpu.dot_dimension_numbers<[1], [0], [0], [1], [0, 0, 1, 1], [], []>} : vector<128x128xf32>, vector<128x128xf32>, vector<128x128xf32> -> vector<128x128xf32>
    %c0_13 = arith.constant 0 : index
    %c0_14 = arith.constant 0 : index
    %13 = vector.load %arg5[%c0_13, %c0_14] : memref<1x128xf32, #tpu.memory_space<vmem>>, vector<1x128xf32>
    %14 = vector.broadcast %13 : vector<1x128xf32> to vector<128x128xf32>
    %15 = arith.addf %12, %14 : vector<128x128xf32>
    %16 = tpu.iota {dimensions = array<i32: 1>} : vector<128x128xi32>
    %c4_i32 = arith.constant 4 : i32
    %17 = vector.broadcast %c4_i32 : i32 to vector<128x128xi32>
    %18 = arith.cmpi slt, %16, %17 : vector<128x128xi32>
    %cst_15 = arith.constant -1.000000e+30 : f32
    %19 = vector.broadcast %cst_15 : f32 to vector<128x128xf32>
    %20 = arith.select %18, %15, %19 : vector<128x128xi1>, vector<128x128xf32>
    %cst_16 = arith.constant dense<0xFF800000> : vector<128xf32>
    %21 = vector.multi_reduction <maximumf>, %20, %cst_16 [1] : vector<128x128xf32> to vector<128xf32>
    %22 = vector.shape_cast %21 : vector<128xf32> to vector<128x1xf32>
    %23 = vector.broadcast %22 : vector<128x1xf32> to vector<128x128xf32>
    %24 = arith.subf %20, %23 : vector<128x128xf32>
    %25 = math.exp %24 : vector<128x128xf32>
    %cst_17 = arith.constant dense<0.000000e+00> : vector<128xf32>
    %26 = vector.multi_reduction <add>, %25, %cst_17 [1] : vector<128x128xf32> to vector<128xf32>
    %27 = vector.shape_cast %26 : vector<128xf32> to vector<128x1xf32>
    %28 = math.log %27 : vector<128x1xf32>
    %29 = vector.broadcast %28 : vector<128x1xf32> to vector<128x128xf32>
    %30 = arith.subf %24, %29 : vector<128x128xf32>
    %c0_18 = arith.constant 0 : index
    %c0_19 = arith.constant 0 : index
    %31 = vector.load %arg6[%c0_18, %c0_19] : memref<128x128xf32, #tpu.memory_space<vmem>>, vector<128x128xf32>
    tpu.vector_store %arg6[%c0_18, %c0_19], %30 {strides = array<i32>} : memref<128x128xf32, #tpu.memory_space<vmem>>, vector<128x128xf32>,
    return
  }
}

</mosaic_0001>

<bundles_post_ra>
// kernel: gcn_forward.1
= control target key start
LH: loop header
LB: loop body
LE: loop exit
PB: predicated region body
PF: predicated region fallthrough
CT: control target
= control target key end

     0   :  { %s1774_s2 = inlined_call_operand.vmem [shape: f32[128,128], index: 2, kind: input, shape index: {}]   ;;  %s1775_s0 = inlined_call_operand.vmem [shape: f32[128,128], index: 0, kind: input, shape index: {}]   ;;  %s1776_s1 = inlined_call_operand.vmem [shape: f32[128,128], index: 1, kind: input, shape index: {}]   ;;  %s1777_s4 = inlined_call_operand.vmem [shape: f32[128,128], index: 4, kind: input, shape index: {}]   ;;  %s1778_s3 = inlined_call_operand.vmem [shape: f32[1,128], index: 3, kind: input, shape index: {}]   ;;  %s1779_s5 = inlined_call_operand.vmem [shape: f32[1,128], index: 5, kind: input, shape index: {}]   ;;  %s1780_s6 = inlined_call_operand.vmem [shape: f32[128,128], index: 6, kind: output, shape index: {}]  }
   0x1   :  { %v70_v0 = vld [vmem:[%s1774_s2 + $0x78] sm:$0xff]  ;;  %v69_v1 = vld [vmem:[%s1774_s2 + $0x70] sm:$0xff]  ;;  %v68_v2 = vld [vmem:[%s1774_s2 + $0x68] sm:$0xff] }
   0x2   :  { %1026 = vmatprep.subr.mxu0 %v70_v0  ;;  %v67_v3 = vld [vmem:[%s1774_s2 + $0x60] sm:$0xff]  ;;  %v66_v5 = vld [vmem:[%s1774_s2 + $0x58] sm:$0xff]  ;;  %v65_v6 = vld [vmem:[%s1774_s2 + $0x50] sm:$0xff] }
   0x3   :  { %1027 = vmatpush3.msra.mxu0 %v70_v0  ;;  %v39_v4 = vld [vmem:[%s1775_s0] sm:$0xff]  ;;  %v64_v7 = vld [vmem:[%s1774_s2 + $0x48] sm:$0xff]  ;;  %v62_v9 = vld [vmem:[%s1774_s2 + $0x38] sm:$0xff] }
   0x4   :  { %1028 = vmatprep.subr.mxu0 %v69_v1  ;;  %1058 = vmatprep.mubr.f32.mxu0 %v39_v4  ;;  %v63_v8 = vld [vmem:[%s1774_s2 + $0x40] sm:$0xff]  ;;  %v61_v10 = vld [vmem:[%s1774_s2 + $0x30] sm:$0xff]  ;;  %v60_v11 = vld [vmem:[%s1774_s2 + $0x28] sm:$0xff] }
   0x5   :  { %1029 = vmatpush3.msra.mxu0 %v69_v1  ;;  %v59_v12 = vld [vmem:[%s1774_s2 + $0x20] sm:$0xff]  ;;  %v58_v13 = vld [vmem:[%s1774_s2 + $0x18] sm:$0xff]  ;;  %v57_v14 = vld [vmem:[%s1774_s2 + $0x10] sm:$0xff] }
   0x6   :  { %1030 = vmatprep.subr.mxu0 %v68_v2  ;;  %v56_v15 = vld [vmem:[%s1774_s2 + $0x8] sm:$0xff]  ;;  %v55_v16 = vld [vmem:[%s1774_s2] sm:$0xff]  ;;  %v41_v18 = vld [vmem:[%s1775_s0 + $0x10] sm:$0xff] }
   0x7   :  { %1031 = vmatpush3.msra.mxu0 %v68_v2  ;;  %v40_v17 = vld [vmem:[%s1775_s0 + $0x8] sm:$0xff]  ;;  %v42_v19 = vld [vmem:[%s1775_s0 + $0x18] sm:$0xff]  ;;  %v43_v20 = vld [vmem:[%s1775_s0 + $0x20] sm:$0xff] }
   0x8   :  { %1032 = vmatprep.subr.mxu0 %v67_v3  ;;  %v44_v21 = vld [vmem:[%s1775_s0 + $0x28] sm:$0xff]  ;;  %v45_v22 = vld [vmem:[%s1775_s0 + $0x30] sm:$0xff]  ;;  %v46_v23 = vld [vmem:[%s1775_s0 + $0x38] sm:$0xff] }
   0x9   :  { %1033 = vmatpush3.msra.mxu0 %v67_v3  ;;  %v47_v24 = vld [vmem:[%s1775_s0 + $0x40] sm:$0xff]  ;;  %v48_v25 = vld [vmem:[%s1775_s0 + $0x48] sm:$0xff]  ;;  %v49_v26 = vld [vmem:[%s1775_s0 + $0x50] sm:$0xff] }
   0xa   :  { %1034 = vmatprep.subr.mxu0 %v66_v5  ;;  %v50_v27 = vld [vmem:[%s1775_s0 + $0x58] sm:$0xff]  ;;  %v51_v28 = vld [vmem:[%s1775_s0 + $0x60] sm:$0xff]  ;;  %v52_v29 = vld [vmem:[%s1775_s0 + $0x68] sm:$0xff] }
   0xb   :  { %1035 = vmatpush3.msra.mxu0 %v66_v5  ;;  %v53_v30 = vld [vmem:[%s1775_s0 + $0x70] sm:$0xff]  ;;  %v54_v31 = vld [vmem:[%s1775_s0 + $0x78] sm:$0xff]  ;;  %v1448_v32 = vld [vmem:[%s1776_s1] sm:$0xff] }
   0xc   :  { %1036 = vmatprep.subr.mxu0 %v65_v6  ;;  %1114 = vmatprep.mubr.f32.mxu1 %v1448_v32  ;;  %v399_v33 = vld [vmem:[%s1777_s4 + $0x78] sm:$0xff]  ;;  %v398_v34 = vld [vmem:[%s1777_s4 + $0x70] sm:$0xff]  ;;  %v397_v35 = vld [vmem:[%s1777_s4 + $0x68] sm:$0xff] }
   0xd   :  { %1037 = vmatpush3.msra.mxu0 %v65_v6  ;;  %v396_v36 = vld [vmem:[%s1777_s4 + $0x60] sm:$0xff]  ;;  %v395_v37 = vld [vmem:[%s1777_s4 + $0x58] sm:$0xff]  ;;  %v394_v38 = vld [vmem:[%s1777_s4 + $0x50] sm:$0xff] }
   0xe   :  { %1038 = vmatprep.subr.mxu0 %v64_v7  ;;  %v393_v39 = vld [vmem:[%s1777_s4 + $0x48] sm:$0xff]  ;;  %v392_v40 = vld [vmem:[%s1777_s4 + $0x40] sm:$0xff]  ;;  %v391_v41 = vld [vmem:[%s1777_s4 + $0x38] sm:$0xff] }
   0xf   :  { %1039 = vmatpush3.msra.mxu0 %v64_v7  ;;  %v390_v42 = vld [vmem:[%s1777_s4 + $0x30] sm:$0xff]  ;;  %v389_v43 = vld [vmem:[%s1777_s4 + $0x28] sm:$0xff]  ;;  %v388_v44 = vld [vmem:[%s1777_s4 + $0x20] sm:$0xff] }
  0x10   :  { %1040 = vmatprep.subr.mxu0 %v63_v8  ;;  %v1490_v61 = vld [vmem:[%s1776_s1 + $0x8] sm:$0xff]  ;;  %v1495_v62 = vld [vmem:[%s1776_s1 + $0x10] sm:$0xff]  ;;  %v1502_v63 = vld [vmem:[%s1776_s1 + $0x18] sm:$0xff] }
  0x11   :  { %1041 = vmatpush3.msra.mxu0 %v63_v8  ;;  %v1507_v0 = vld [vmem:[%s1776_s1 + $0x20] sm:$0xff]  ;;  %v1514_v1 = vld [vmem:[%s1776_s1 + $0x28] sm:$0xff]  ;;  %v1519_v2 = vld [vmem:[%s1776_s1 + $0x30] sm:$0xff] }
  0x12   :  { %1042 = vmatprep.subr.mxu0 %v62_v9  ;;  %v1526_v3 = vld [vmem:[%s1776_s1 + $0x38] sm:$0xff]  ;;  %v1531_v4 = vld [vmem:[%s1776_s1 + $0x40] sm:$0xff]  ;;  %v1538_v5 = vld [vmem:[%s1776_s1 + $0x48] sm:$0xff] }
  0x13   :  { %1043 = vmatpush3.msra.mxu0 %v62_v9  ;;  %v1543_v6 = vld [vmem:[%s1776_s1 + $0x50] sm:$0xff]  ;;  %v1550_v7 = vld [vmem:[%s1776_s1 + $0x58] sm:$0xff]  ;;  %v1555_v8 = vld [vmem:[%s1776_s1 + $0x60] sm:$0xff] }
  0x14   :  { %1044 = vmatprep.subr.mxu0 %v61_v10  ;;  %v1562_v9 = vld [vmem:[%s1776_s1 + $0x68] sm:$0xff] }
  0x15   :  { %1045 = vmatpush3.msra.mxu0 %v61_v10  ;;  %v1567_v10 = vld [vmem:[%s1776_s1 + $0x70] sm:$0xff] }
  0x16   :  { %1046 = vmatprep.subr.mxu0 %v60_v11 }
  0x17   :  { %1047 = vmatpush3.msra.mxu0 %v60_v11  ;;  %v1574_v11 = vld [vmem:[%s1776_s1 + $0x78] sm:$0xff] }
  0x18   :  { %1048 = vmatprep.subr.mxu0 %v59_v12 }
  0x19   :  { %1049 = vmatpush3.msra.mxu0 %v59_v12  ;;  %v387_v12 = vld [vmem:[%s1777_s4 + $0x18] sm:$0xff] }
  0x1a   :  { %1050 = vmatprep.subr.mxu0 %v58_v13 }
  0x1b   :  { %1051 = vmatpush3.msra.mxu0 %v58_v13  ;;  %v386_v13 = vld [vmem:[%s1777_s4 + $0x10] sm:$0xff] }
  0x1c   :  { %1052 = vmatprep.subr.mxu0 %v57_v14 }
  0x1d   :  { %1053 = vmatpush3.msra.mxu0 %v57_v14  ;;  %v385_v14 = vld [vmem:[%s1777_s4 + $0x8] sm:$0xff] }
  0x1e   :  { %1054 = vmatprep.subr.mxu0 %v56_v15 }
  0x1f   :  { %1055 = vmatpush3.msra.mxu0 %v56_v15  ;;  %v384_v15 = vld [vmem:[%s1777_s4] sm:$0xff] }
  0x20   :  { %1056 = vmatprep.subr.mxu0 %v55_v16 }
  0x21   :  { %1057 = vmatpush3.msra.mxu0 %v55_v16  ;;  %v896_v16 = vld [vmem:[%s1778_s3] ss:$0 sm:$0xff] }
  0x22   :  { %1059 = vmatmul.mubr.f32.vlgmr.msra.gmra.mxu0 %v40_v17  ;;  %1138 = vmatprep.subr.mxu0 %v399_v33 }
  0x23   :  { %1061 = vmatprep.mubr.f32.mxu0 %v41_v18  ;;  %1139 = vmatpush3.msra.mxu0 %v399_v33 }
  0x24   :  { %1140 = vmatprep.subr.mxu0 %v398_v34 }
  0x25   :  { %1141 = vmatpush3.msra.mxu0 %v398_v34 }
  0x26   :  { %1062 = vmatmul.mubr.f32.gmra.mxu0 %v42_v19  ;;  %1142 = vmatprep.subr.mxu0 %v397_v35 }
  0x27   :  { %1064 = vmatprep.mubr.f32.mxu0 %v43_v20  ;;  %1143 = vmatpush3.msra.mxu0 %v397_v35 }
  0x28   :  { %1144 = vmatprep.subr.mxu0 %v396_v36 }
  0x29   :  { %1145 = vmatpush3.msra.mxu0 %v396_v36 }
  0x2a   :  { %1065 = vmatmul.mubr.f32.gmra.mxu0 %v44_v21  ;;  %1146 = vmatprep.subr.mxu0 %v395_v37 }
  0x2b   :  { %1067 = vmatprep.mubr.f32.mxu0 %v45_v22  ;;  %1147 = vmatpush3.msra.mxu0 %v395_v37 }
  0x2c   :  { %1148 = vmatprep.subr.mxu0 %v394_v38 }
  0x2d   :  { %1149 = vmatpush3.msra.mxu0 %v394_v38 }
  0x2e   :  { %1068 = vmatmul.mubr.f32.gmra.mxu0 %v46_v23  ;;  %1150 = vmatprep.subr.mxu0 %v393_v39 }
  0x2f   :  { %1070 = vmatprep.mubr.f32.mxu0 %v47_v24  ;;  %1151 = vmatpush3.msra.mxu0 %v393_v39 }
  0x30   :  { %1152 = vmatprep.subr.mxu0 %v392_v40 }
  0x31   :  { %1153 = vmatpush3.msra.mxu0 %v392_v40 }
  0x32   :  { %1071 = vmatmul.mubr.f32.gmra.mxu0 %v48_v25  ;;  %1154 = vmatprep.subr.mxu0 %v391_v41 }
  0x33   :  { %1073 = vmatprep.mubr.f32.mxu0 %v49_v26  ;;  %1155 = vmatpush3.msra.mxu0 %v391_v41 }
  0x34   :  { %1156 = vmatprep.subr.mxu0 %v390_v42 }
  0x35   :  { %1157 = vmatpush3.msra.mxu0 %v390_v42 }
  0x36   :  { %1074 = vmatmul.mubr.f32.gmra.mxu0 %v50_v27  ;;  %1158 = vmatprep.subr.mxu0 %v389_v43 }
  0x37   :  { %1076 = vmatprep.mubr.f32.mxu0 %v51_v28  ;;  %1159 = vmatpush3.msra.mxu0 %v389_v43 }
  0x38   :  { %1160 = vmatprep.subr.mxu0 %v388_v44 }
  0x39   :  { %1161 = vmatpush3.msra.mxu0 %v388_v44 }
  0x3a   :  { %1077 = vmatmul.mubr.f32.gmra.mxu0 %v52_v29  ;;  %1162 = vmatprep.subr.mxu0 %v387_v12 }
  0x3b   :  { %1079 = vmatprep.mubr.f32.mxu0 %v53_v30  ;;  %1163 = vmatpush3.msra.mxu0 %v387_v12 }
  0x3c   :  { %1164 = vmatprep.subr.mxu0 %v386_v13 }
  0x3d   :  { %1165 = vmatpush3.msra.mxu0 %v386_v13 }
  0x3e   :  { %1080 = vmatmul.mubr.f32.gmra.mxu0 %v54_v31  ;;  %1166 = vmatprep.subr.mxu0 %v385_v14 }
  0x3f   :  { %1167 = vmatpush3.msra.mxu0 %v385_v14 }
  0x40   :  { %1168 = vmatprep.subr.mxu0 %v384_v15 }
  0x41   :  { %1169 = vmatpush3.msra.mxu0 %v384_v15 }
  0xe2   :  { %v1060_v45 = vpop.f32.mrf.mxu0 }
  0xe4   :  { %v137_v46 = vpop.f32.mrf.mxu0 }
  0xe6   :  { %v1063_v47 = vpop.f32.mrf.mxu0 }
  0xe8   :  { %v147_v48 = vpop.f32.mrf.mxu0 }
  0xea   :  { %v1066_v49 = vpop.f32.mrf.mxu0 }
  0xec   :  { %v157_v50 = vpop.f32.mrf.mxu0 }
  0xee   :  { %v1069_v51 = vpop.f32.mrf.mxu0 }
  0xf0   :  { %v167_v52 = vpop.f32.mrf.mxu0 }
  0xf2   :  { %v1072_v53 = vpop.f32.mrf.mxu0 }
  0xf4   :  { %v177_v54 = vpop.f32.mrf.mxu0 }
  0xf6   :  { %v1075_v55 = vpop.f32.mrf.mxu0 }
  0xf8   :  { %v187_v56 = vpop.f32.mrf.mxu0 }
  0xfa   :  { %v1078_v57 = vpop.f32.mrf.mxu0 }
  0xfc   :  { %v197_v58 = vpop.f32.mrf.mxu0 }
  0xfe   :  { %v1081_v59 = vpop.f32.mrf.mxu0 }
  0xff   :  { %1082 = vmatprep.subr.mxu1 %v1081_v59 }
 0x100   :  { %v207_v60 = vpop.f32.mrf.mxu0  ;;  %1083 = vmatpush3.msra.mxu1 %v1081_v59 }
 0x101   :  { %1084 = vmatprep.subr.mxu1 %v207_v60 }
 0x102   :  { %1085 = vmatpush3.msra.mxu1 %v207_v60 }
 0x103   :  { %1086 = vmatprep.subr.mxu1 %v1078_v57 }
 0x104   :  { %1087 = vmatpush3.msra.mxu1 %v1078_v57 }
 0x105   :  { %1088 = vmatprep.subr.mxu1 %v197_v58 }
 0x106   :  { %1089 = vmatpush3.msra.mxu1 %v197_v58 }
 0x107   :  { %1090 = vmatprep.subr.mxu1 %v1075_v55 }
 0x108   :  { %1091 = vmatpush3.msra.mxu1 %v1075_v55 }
 0x109   :  { %1092 = vmatprep.subr.mxu1 %v187_v56 }
 0x10a   :  { %1093 = vmatpush3.msra.mxu1 %v187_v56 }
 0x10b   :  { %1094 = vmatprep.subr.mxu1 %v1072_v53 }
 0x10c   :  { %1095 = vmatpush3.msra.mxu1 %v1072_v53 }
 0x10d   :  { %1096 = vmatprep.subr.mxu1 %v177_v54 }
 0x10e   :  { %1097 = vmatpush3.msra.mxu1 %v177_v54 }
 0x10f   :  { %1098 = vmatprep.subr.mxu1 %v1069_v51 }
 0x110   :  { %1099 = vmatpush3.msra.mxu1 %v1069_v51 }
 0x111   :  { %1100 = vmatprep.subr.mxu1 %v167_v52 }
 0x112   :  { %1101 = vmatpush3.msra.mxu1 %v167_v52 }
 0x113   :  { %1102 = vmatprep.subr.mxu1 %v1066_v49 }
 0x114   :  { %1103 = vmatpush3.msra.mxu1 %v1066_v49 }
 0x115   :  { %1104 = vmatprep.subr.mxu1 %v157_v50 }
 0x116   :  { %1105 = vmatpush3.msra.mxu1 %v157_v50 }
 0x117   :  { %1106 = vmatprep.subr.mxu1 %v1063_v47 }
 0x118   :  { %1107 = vmatpush3.msra.mxu1 %v1063_v47 }
 0x119   :  { %1108 = vmatprep.subr.mxu1 %v147_v48 }
 0x11a   :  { %1109 = vmatpush3.msra.mxu1 %v147_v48 }
 0x11b   :  { %1110 = vmatprep.subr.mxu1 %v1060_v45 }
 0x11c   :  { %1111 = vmatpush3.msra.mxu1 %v1060_v45 }
 0x11d   :  { %1112 = vmatprep.subr.mxu1 %v137_v46 }
 0x11e   :  { %1113 = vmatpush3.msra.mxu1 %v137_v46 }
 0x11f   :  { %1115 = vmatmul.mubr.f32.vlgmr.msra.gmra.mxu1 %v1490_v61 }
 0x120   :  { %1117 = vmatprep.mubr.f32.mxu1 %v1495_v62 }
 0x123   :  { %1118 = vmatmul.mubr.f32.gmra.mxu1 %v1502_v63 }
 0x124   :  { %1120 = vmatprep.mubr.f32.mxu1 %v1507_v0 }
 0x127   :  { %1121 = vmatmul.mubr.f32.gmra.mxu1 %v1514_v1 }
 0x128   :  { %1123 = vmatprep.mubr.f32.mxu1 %v1519_v2 }
 0x12b   :  { %1124 = vmatmul.mubr.f32.gmra.mxu1 %v1526_v3 }
 0x12c   :  { %1126 = vmatprep.mubr.f32.mxu1 %v1531_v4 }
 0x12f   :  { %1127 = vmatmul.mubr.f32.gmra.mxu1 %v1538_v5 }
 0x130   :  { %1129 = vmatprep.mubr.f32.mxu1 %v1543_v6 }
 0x133   :  { %1130 = vmatmul.mubr.f32.gmra.mxu1 %v1550_v7 }
 0x134   :  { %1132 = vmatprep.mubr.f32.mxu1 %v1555_v8 }
 0x137   :  { %1133 = vmatmul.mubr.f32.gmra.mxu1 %v1562_v9 }
 0x138   :  { %1135 = vmatprep.mubr.f32.mxu1 %v1567_v10 }
 0x13b   :  { %1136 = vmatmul.mubr.f32.gmra.mxu1 %v1574_v11 }
 0x13c   :  { %1226 = vmatprep.mubr.f32.mxu1 %v1448_v32 }
 0x1df   :  { %v1116_v17 = vpop.f32.mrf.mxu1 }
 0x1e0   :  { %v295_v18 = vadd.f32 %v1116_v17, %v896_v16 }
 0x1e1   :  { %v289_v19 = vpop.f32.mrf.mxu1 }
 0x1e2   :  { %v290_v20 = vadd.f32 %v896_v16, %v289_v19  ;;  %v369_v23 = vmax.f32 %v295_v18, 0.0 }
 0x1e3   :  { %v1119_v21 = vpop.f32.mrf.mxu1 }
 0x1e4   :  { %v368_v22 = vmax.f32 %v290_v20, 0.0  ;;  %v305_v24 = vadd.f32 %v1119_v21, %v896_v16 }
 0x1e5   :  { %v299_v25 = vpop.f32.mrf.mxu1 }
 0x1e6   :  { %v300_v26 = vadd.f32 %v896_v16, %v299_v25  ;;  %1170 = vmatprep.mubr.f32.mxu0 %v368_v22  ;;  %v371_v29 = vmax.f32 %v305_v24, 0.0 }
 0x1e7   :  { %v1122_v27 = vpop.f32.mrf.mxu1  ;;  %1171 = vmatmul.mubr.f32.vlgmr.msra.gmra.mxu0 %v369_v23 }
 0x1e8   :  { %v370_v28 = vmax.f32 %v300_v26, 0.0  ;;  %v315_v30 = vadd.f32 %v1122_v27, %v896_v16 }
 0x1e9   :  { %v309_v31 = vpop.f32.mrf.mxu1 }
 0x1ea   :  { %v310_v32 = vadd.f32 %v896_v16, %v309_v31  ;;  %1173 = vmatprep.mubr.f32.mxu0 %v370_v28  ;;  %v373_v35 = vmax.f32 %v315_v30, 0.0 }
 0x1eb   :  { %v1125_v33 = vpop.f32.mrf.mxu1  ;;  %1174 = vmatmul.mubr.f32.gmra.mxu0 %v371_v29 }
 0x1ec   :  { %v372_v34 = vmax.f32 %v310_v32, 0.0  ;;  %v325_v36 = vadd.f32 %v1125_v33, %v896_v16 }
 0x1ed   :  { %v319_v37 = vpop.f32.mrf.mxu1 }
 0x1ee   :  { %v320_v38 = vadd.f32 %v896_v16, %v319_v37  ;;  %1176 = vmatprep.mubr.f32.mxu0 %v372_v34  ;;  %v375_v41 = vmax.f32 %v325_v36, 0.0 }
 0x1ef   :  { %v1128_v39 = vpop.f32.mrf.mxu1  ;;  %1177 = vmatmul.mubr.f32.gmra.mxu0 %v373_v35 }
 0x1f0   :  { %v374_v40 = vmax.f32 %v320_v38, 0.0  ;;  %v335_v42 = vadd.f32 %v1128_v39, %v896_v16 }
 0x1f1   :  { %v329_v43 = vpop.f32.mrf.mxu1 }
 0x1f2   :  { %v330_v44 = vadd.f32 %v896_v16, %v329_v43  ;;  %1179 = vmatprep.mubr.f32.mxu0 %v374_v40  ;;  %v377_v47 = vmax.f32 %v335_v42, 0.0 }
 0x1f3   :  { %v1131_v45 = vpop.f32.mrf.mxu1  ;;  %1180 = vmatmul.mubr.f32.gmra.mxu0 %v375_v41 }
 0x1f4   :  { %v376_v46 = vmax.f32 %v330_v44, 0.0  ;;  %v345_v48 = vadd.f32 %v1131_v45, %v896_v16 }
 0x1f5   :  { %v339_v49 = vpop.f32.mrf.mxu1 }
 0x1f6   :  { %v340_v50 = vadd.f32 %v896_v16, %v339_v49  ;;  %1182 = vmatprep.mubr.f32.mxu0 %v376_v46  ;;  %v379_v53 = vmax.f32 %v345_v48, 0.0 }
 0x1f7   :  { %v1134_v51 = vpop.f32.mrf.mxu1  ;;  %1183 = vmatmul.mubr.f32.gmra.mxu0 %v377_v47 }
 0x1f8   :  { %v378_v52 = vmax.f32 %v340_v50, 0.0  ;;  %v355_v54 = vadd.f32 %v1134_v51, %v896_v16 }
 0x1f9   :  { %v349_v55 = vpop.f32.mrf.mxu1 }
 0x1fa   :  { %v350_v56 = vadd.f32 %v896_v16, %v349_v55  ;;  %1185 = vmatprep.mubr.f32.mxu0 %v378_v52  ;;  %v381_v59 = vmax.f32 %v355_v54, 0.0 }
 0x1fb   :  { %v1137_v57 = vpop.f32.mrf.mxu1  ;;  %1186 = vmatmul.mubr.f32.gmra.mxu0 %v379_v53 }
 0x1fc   :  { %v380_v58 = vmax.f32 %v350_v56, 0.0  ;;  %v365_v60 = vadd.f32 %v1137_v57, %v896_v16 }
 0x1fd   :  { %v359_v12 = vpop.f32.mrf.mxu1 }
 0x1fe   :  { %v360_v13 = vadd.f32 %v896_v16, %v359_v12  ;;  %1188 = vmatprep.mubr.f32.mxu0 %v380_v58  ;;  %v383_v15 = vmax.f32 %v365_v60, 0.0 }
 0x1ff   :  { %1189 = vmatmul.mubr.f32.gmra.mxu0 %v381_v59 }
 0x200   :  { %v382_v14 = vmax.f32 %v360_v13, 0.0 }
 0x202   :  { %1191 = vmatprep.mubr.f32.mxu0 %v382_v14 }
 0x203   :  { %1192 = vmatmul.mubr.f32.gmra.mxu0 %v383_v15 }
 0x2a7   :  { %v1172_v17 = vpop.f32.mrf.mxu0 }
 0x2a9   :  { %v466_v18 = vpop.f32.mrf.mxu0 }
 0x2ab   :  { %v1175_v19 = vpop.f32.mrf.mxu0 }
 0x2ad   :  { %v476_v20 = vpop.f32.mrf.mxu0 }
 0x2af   :  { %v1178_v21 = vpop.f32.mrf.mxu0 }
 0x2b1   :  { %v486_v22 = vpop.f32.mrf.mxu0 }
 0x2b3   :  { %v1181_v23 = vpop.f32.mrf.mxu0 }
 0x2b5   :  { %v496_v24 = vpop.f32.mrf.mxu0 }
 0x2b7   :  { %v1184_v25 = vpop.f32.mrf.mxu0 }
 0x2b9   :  { %v506_v26 = vpop.f32.mrf.mxu0 }
 0x2bb   :  { %v1187_v27 = vpop.f32.mrf.mxu0 }
 0x2bd   :  { %v516_v28 = vpop.f32.mrf.mxu0 }
 0x2bf   :  { %v1190_v29 = vpop.f32.mrf.mxu0 }
 0x2c1   :  { %v526_v16 = vpop.f32.mrf.mxu0 }
 0x2c3   :  { %v1193_v30 = vpop.f32.mrf.mxu0 }
 0x2c4   :  { %1194 = vmatprep.subr.mxu1 %v1193_v30 }
 0x2c5   :  { %v536_v31 = vpop.f32.mrf.mxu0  ;;  %1195 = vmatpush3.msra.mxu1 %v1193_v30 }
 0x2c6   :  { %1196 = vmatprep.subr.mxu1 %v536_v31 }
 0x2c7   :  { %1197 = vmatpush3.msra.mxu1 %v536_v31 }
 0x2c8   :  { %1198 = vmatprep.subr.mxu1 %v1190_v29 }
 0x2c9   :  { %1199 = vmatpush3.msra.mxu1 %v1190_v29 }
 0x2ca   :  { %1200 = vmatprep.subr.mxu1 %v526_v16 }
 0x2cb   :  { %1201 = vmatpush3.msra.mxu1 %v526_v16 }
 0x2cc   :  { %1202 = vmatprep.subr.mxu1 %v1187_v27 }
 0x2cd   :  { %1203 = vmatpush3.msra.mxu1 %v1187_v27 }
 0x2ce   :  { %1204 = vmatprep.subr.mxu1 %v516_v28 }
 0x2cf   :  { %1205 = vmatpush3.msra.mxu1 %v516_v28 }
 0x2d0   :  { %1206 = vmatprep.subr.mxu1 %v1184_v25 }
 0x2d1   :  { %1207 = vmatpush3.msra.mxu1 %v1184_v25 }
 0x2d2   :  { %1208 = vmatprep.subr.mxu1 %v506_v26 }
 0x2d3   :  { %1209 = vmatpush3.msra.mxu1 %v506_v26 }
 0x2d4   :  { %1210 = vmatprep.subr.mxu1 %v1181_v23 }
 0x2d5   :  { %1211 = vmatpush3.msra.mxu1 %v1181_v23 }
 0x2d6   :  { %1212 = vmatprep.subr.mxu1 %v496_v24 }
 0x2d7   :  { %1213 = vmatpush3.msra.mxu1 %v496_v24 }
 0x2d8   :  { %1214 = vmatprep.subr.mxu1 %v1178_v21 }
 0x2d9   :  { %1215 = vmatpush3.msra.mxu1 %v1178_v21 }
 0x2da   :  { %1216 = vmatprep.subr.mxu1 %v486_v22 }
 0x2db   :  { %1217 = vmatpush3.msra.mxu1 %v486_v22 }
 0x2dc   :  { %1218 = vmatprep.subr.mxu1 %v1175_v19 }
 0x2dd   :  { %1219 = vmatpush3.msra.mxu1 %v1175_v19 }
 0x2de   :  { %1220 = vmatprep.subr.mxu1 %v476_v20 }
 0x2df   :  { %1221 = vmatpush3.msra.mxu1 %v476_v20 }
 0x2e0   :  { %1222 = vmatprep.subr.mxu1 %v1172_v17 }
 0x2e1   :  { %1223 = vmatpush3.msra.mxu1 %v1172_v17 }
 0x2e2   :  { %1224 = vmatprep.subr.mxu1 %v466_v18 }
 0x2e3   :  { %1225 = vmatpush3.msra.mxu1 %v466_v18 }
 0x2e4   :  { %1227 = vmatmul.mubr.f32.vlgmr.msra.gmra.mxu1 %v1490_v61  ;;  %v697_v61 = vlaneseq }
 0x2e5   :  { %1229 = vmatprep.mubr.f32.mxu1 %v1495_v62 }
 0x2e6   :  { %v1608_v62 = vand.u32 127, %v697_v61 }
 0x2e8   :  { %1230 = vmatmul.mubr.f32.gmra.mxu1 %v1502_v63  ;;  %v897_v63 = vld [vmem:[%s1779_s5] ss:$0 sm:$0xff]  ;;  %vm699_vm0 = vcmp.lt.s32.totalorder %v1608_v62, 4 }
 0x2e9   :  { %1232 = vmatprep.mubr.f32.mxu1 %v1507_v0 }
 0x2ec   :  { %1233 = vmatmul.mubr.f32.gmra.mxu1 %v1514_v1 }
 0x2ed   :  { %1235 = vmatprep.mubr.f32.mxu1 %v1519_v2 }
 0x2f0   :  { %1236 = vmatmul.mubr.f32.gmra.mxu1 %v1526_v3 }
 0x2f1   :  { %1238 = vmatprep.mubr.f32.mxu1 %v1531_v4 }
 0x2f4   :  { %1239 = vmatmul.mubr.f32.gmra.mxu1 %v1538_v5 }
 0x2f5   :  { %1241 = vmatprep.mubr.f32.mxu1 %v1543_v6 }
 0x2f8   :  { %1242 = vmatmul.mubr.f32.gmra.mxu1 %v1550_v7 }
 0x2f9   :  { %1244 = vmatprep.mubr.f32.mxu1 %v1555_v8 }
 0x2fc   :  { %1245 = vmatmul.mubr.f32.gmra.mxu1 %v1562_v9 }
 0x2fd   :  { %1247 = vmatprep.mubr.f32.mxu1 %v1567_v10 }
 0x300   :  { %1248 = vmatmul.mubr.f32.gmra.mxu1 %v1574_v11 }
 0x3a4   :  { %v1228_v0 = vpop.f32.mrf.mxu1 }
 0x3a5   :  { %v624_v1 = vadd.f32 %v1228_v0, %v897_v63 }
 0x3a6   :  { %v618_v2 = vpop.f32.mrf.mxu1 }
 0x3a7   :  { %v619_v3 = vadd.f32 %v897_v63, %v618_v2  ;;  %v701_v4 = vsel %vm699_vm0, %v624_v1, -1e+30 }
 0x3a8   :  { %718 = vmax.xlane.f32.xlu0 %v701_v4  ;;  %v1231_v5 = vpop.f32.mrf.mxu1 }
 0x3a9   :  { %v634_v6 = vadd.f32 %v1231_v5, %v897_v63  ;;  %v700_v10 = vsel %vm699_vm0, %v619_v3, -1e+30 }
 0x3aa   :  { %v628_v7 = vpop.f32.mrf.mxu1 }
 0x3ab   :  { %v629_v8 = vadd.f32 %v897_v63, %v628_v7  ;;  %v703_v9 = vsel %vm699_vm0, %v634_v6, -1e+30 }
 0x3ac   :  { %722 = vmax.xlane.f32.xlu1 %v703_v9  ;;  %v1234_v11 = vpop.f32.mrf.mxu1  ;;  %716 = vmax.xlane.f32.xlu0 %v700_v10 }
 0x3ad   :  { %v644_v33 = vadd.f32 %v1234_v11, %v897_v63  ;;  %v702_v35 = vsel %vm699_vm0, %v629_v8, -1e+30 }
 0x3ae   :  { %v638_v32 = vpop.f32.mrf.mxu1 }
 0x3af   :  { %v639_v34 = vadd.f32 %v897_v63, %v638_v32  ;;  %v705_v41 = vsel %vm699_vm0, %v644_v33, -1e+30 }
 0x3b0   :  { %v1237_v36 = vpop.f32.mrf.mxu1  ;;  %720 = vmax.xlane.f32.xlu1 %v702_v35 }
 0x3b1   :  { %v704_v37 = vsel %vm699_vm0, %v639_v34, -1e+30  ;;  %v654_v39 = vadd.f32 %v1237_v36, %v897_v63 }
 0x3b2   :  { %v648_v38 = vpop.f32.mrf.mxu1  ;;  %724 = vmax.xlane.f32.xlu0 %v704_v37 }
 0x3b3   :  { %v649_v40 = vadd.f32 %v897_v63, %v648_v38  ;;  %v707_v47 = vsel %vm699_vm0, %v654_v39, -1e+30 }
 0x3b4   :  { %v1240_v42 = vpop.f32.mrf.mxu1  ;;  %726 = vmax.xlane.f32.xlu1 %v705_v41 }
 0x3b5   :  { %v706_v43 = vsel %vm699_vm0, %v649_v40, -1e+30  ;;  %v664_v45 = vadd.f32 %v1240_v42, %v897_v63 }
 0x3b6   :  { %v658_v44 = vpop.f32.mrf.mxu1  ;;  %728 = vmax.xlane.f32.xlu0 %v706_v43 }
 0x3b7   :  { %v659_v46 = vadd.f32 %v897_v63, %v658_v44  ;;  %v709_v53 = vsel %vm699_vm0, %v664_v45, -1e+30 }
 0x3b8   :  { %v1243_v48 = vpop.f32.mrf.mxu1  ;;  %730 = vmax.xlane.f32.xlu1 %v707_v47 }
 0x3b9   :  { %v708_v49 = vsel %vm699_vm0, %v659_v46, -1e+30  ;;  %v674_v51 = vadd.f32 %v1243_v48, %v897_v63 }
 0x3ba   :  { %v668_v50 = vpop.f32.mrf.mxu1  ;;  %732 = vmax.xlane.f32.xlu0 %v708_v49 }
 0x3bb   :  { %v669_v52 = vadd.f32 %v897_v63, %v668_v50  ;;  %v711_v59 = vsel %vm699_vm0, %v674_v51, -1e+30 }
 0x3bc   :  { %v1246_v54 = vpop.f32.mrf.mxu1  ;;  %734 = vmax.xlane.f32.xlu1 %v709_v53 }
 0x3bd   :  { %v710_v55 = vsel %vm699_vm0, %v669_v52, -1e+30  ;;  %v684_v57 = vadd.f32 %v1246_v54, %v897_v63 }
 0x3be   :  { %v678_v56 = vpop.f32.mrf.mxu1  ;;  %736 = vmax.xlane.f32.xlu0 %v710_v55 }
 0x3bf   :  { %v679_v58 = vadd.f32 %v897_v63, %v678_v56  ;;  %v1645_v17 = vsel %vm699_vm0, %v684_v57, -1e+30 }
 0x3c0   :  { %v1249_v60 = vpop.f32.mrf.mxu1  ;;  %738 = vmax.xlane.f32.xlu1 %v711_v59 }
 0x3c1   :  { %v1640_v12 = vsel %vm699_vm0, %v679_v58, -1e+30  ;;  %v694_v14 = vadd.f32 %v1249_v60, %v897_v63 }
 0x3c2   :  { %v688_v13 = vpop.f32.mrf.mxu1  ;;  %740 = vmax.xlane.f32.xlu0 %v1640_v12 }
 0x3c3   :  { %v689_v15 = vadd.f32 %v897_v63, %v688_v13  ;;  %v1655_v19 = vsel %vm699_vm0, %v694_v14, -1e+30 }
 0x3c4   :  { %742 = vmax.xlane.f32.xlu1 %v1645_v17 }
 0x3c5   :  { %v1650_v18 = vsel %vm699_vm0, %v689_v15, -1e+30 }
 0x3c6   :  { %744 = vmax.xlane.f32.xlu0 %v1650_v18 }
 0x3c8   :  { %746 = vmax.xlane.f32.xlu1 %v1655_v19 }
 0x431   :  { %v719_v20 = vpop.xlane.xlu0 %718 }
 0x432   :  { %v1658_v21 = vsub.f32 %v701_v4, %v719_v20 }
 0x434   :  { %v766_v22 = vmul.f32 1.442695, %v1658_v21 }
 0x435   :  { %v723_v23 = vpop.xlane.xlu1 %722  ;;  %v717_v24 = vpop.xlane.xlu0 %716 }
 0x436   :  { %1250 = vpow2.f32 %v766_v22  ;;  %v1661_v25 = vsub.f32 %v703_v9, %v723_v23  ;;  %v1663_v26 = vsub.f32 %v700_v10, %v717_v24 }
 0x438   :  { %v770_v27 = vmul.f32 1.442695, %v1661_v25  ;;  %v764_v28 = vmul.f32 1.442695, %v1663_v26 }
 0x439   :  { %v721_v29 = vpop.xlane.xlu1 %720 }
 0x43a   :  { %1252 = vpow2.f32 %v770_v27  ;;  %v1667_v16 = vsub.f32 %v702_v35, %v721_v29 }
 0x43b   :  { %1254 = vpow2.f32 %v764_v28  ;;  %v725_v30 = vpop.xlane.xlu0 %724 }
 0x43c   :  { %v768_v31 = vmul.f32 1.442695, %v1667_v16  ;;  %v1670_v61 = vsub.f32 %v704_v37, %v725_v30 }
 0x43d   :  { %v727_v62 = vpop.xlane.xlu1 %726 }
 0x43e   :  { %1256 = vpow2.f32 %v768_v31  ;;  %v1672_v63 = vsub.f32 %v705_v41, %v727_v62  ;;  %v772_v0 = vmul.f32 1.442695, %v1670_v61 }
 0x43f   :  { %v729_v1 = vpop.xlane.xlu0 %728 }
 0x440   :  { %v774_v2 = vmul.f32 1.442695, %v1672_v63  ;;  %v1676_v3 = vsub.f32 %v706_v43, %v729_v1 }
 0x441   :  { %v731_v4 = vpop.xlane.xlu1 %730 }
 0x442   :  { %1258 = vpow2.f32 %v774_v2  ;;  %v1678_v5 = vsub.f32 %v707_v47, %v731_v4  ;;  %v776_v7 = vmul.f32 1.442695, %v1676_v3 }
 0x443   :  { %v1251_v6 = vpop.eup %1250  ;;  %1260 = vpow2.f32 %v772_v0  ;;  %v733_v8 = vpop.xlane.xlu0 %732 }
 0x444   :  { %v778_v9 = vmul.f32 1.442695, %v1678_v5  ;;  %v1682_v10 = vsub.f32 %v708_v49, %v733_v8  ;;  %798 = vadd.xlane.f32.xlu1 %v1251_v6 }
 0x445   :  { %v735_v11 = vpop.xlane.xlu1 %734 }
 0x446   :  { %1262 = vpow2.f32 %v778_v9  ;;  %v1684_v32 = vsub.f32 %v709_v53, %v735_v11  ;;  %v780_v34 = vmul.f32 1.442695, %v1682_v10 }
 0x447   :  { %v1253_v33 = vpop.eup %1252  ;;  %1264 = vpow2.f32 %v776_v7  ;;  %v737_v35 = vpop.xlane.xlu0 %736 }
 0x448   :  { %v1255_v36 = vpop.eup %1254  ;;  %v782_v37 = vmul.f32 1.442695, %v1684_v32  ;;  %v1688_v38 = vsub.f32 %v710_v55, %v737_v35  ;;  %802 = vadd.xlane.f32.xlu1 %v1253_v33 }
 0x449   :  { %796 = vadd.xlane.f32.xlu0 %v1255_v36  ;;  %v739_v39 = vpop.xlane.xlu1 %738 }
 0x44a   :  { %1266 = vpow2.f32 %v782_v37  ;;  %v1690_v40 = vsub.f32 %v711_v59, %v739_v39  ;;  %v784_v42 = vmul.f32 1.442695, %v1688_v38 }
 0x44b   :  { %v1257_v41 = vpop.eup %1256  ;;  %1268 = vpow2.f32 %v780_v34  ;;  %v741_v43 = vpop.xlane.xlu0 %740 }
 0x44c   :  { %v786_v44 = vmul.f32 1.442695, %v1690_v40  ;;  %v1695_v45 = vsub.f32 %v1640_v12, %v741_v43 }
 0x44d   :  { %800 = vadd.xlane.f32.xlu0 %v1257_v41  ;;  %v743_v46 = vpop.xlane.xlu1 %742 }
 0x44e   :  { %1270 = vpow2.f32 %v786_v44  ;;  %v1698_v47 = vsub.f32 %v1645_v17, %v743_v46  ;;  %v788_v49 = vmul.f32 1.442695, %v1695_v45 }
 0x44f   :  { %v1259_v48 = vpop.eup %1258  ;;  %1272 = vpow2.f32 %v784_v42  ;;  %v745_v50 = vpop.xlane.xlu0 %744 }
 0x450   :  { %v1261_v51 = vpop.eup %1260  ;;  %v790_v52 = vmul.f32 1.442695, %v1698_v47  ;;  %v1703_v53 = vsub.f32 %v1650_v18, %v745_v50  ;;  %806 = vadd.xlane.f32.xlu1 %v1259_v48 }
 0x451   :  { %804 = vadd.xlane.f32.xlu0 %v1261_v51  ;;  %v747_v54 = vpop.xlane.xlu1 %746 }
 0x452   :  { %1274 = vpow2.f32 %v790_v52  ;;  %v1706_v55 = vsub.f32 %v1655_v19, %v747_v54  ;;  %v792_v57 = vmul.f32 1.442695, %v1703_v53 }
 0x453   :  { %v1263_v56 = vpop.eup %1262  ;;  %1276 = vpow2.f32 %v788_v49 }
 0x454   :  { %v1265_v58 = vpop.eup %1264  ;;  %v794_v59 = vmul.f32 1.442695, %v1706_v55  ;;  %810 = vadd.xlane.f32.xlu1 %v1263_v56 }
 0x455   :  { %808 = vadd.xlane.f32.xlu0 %v1265_v58 }
 0x456   :  { %1278 = vpow2.f32 %v794_v59 }
 0x457   :  { %v1267_v60 = vpop.eup %1266  ;;  %1280 = vpow2.f32 %v792_v57 }
 0x458   :  { %v1269_v12 = vpop.eup %1268  ;;  %814 = vadd.xlane.f32.xlu1 %v1267_v60 }
 0x459   :  { %812 = vadd.xlane.f32.xlu0 %v1269_v12 }
 0x45b   :  { %v1271_v13 = vpop.eup %1270 }
 0x45c   :  { %v1273_v14 = vpop.eup %1272  ;;  %818 = vadd.xlane.f32.xlu1 %v1271_v13 }
 0x45d   :  { %816 = vadd.xlane.f32.xlu0 %v1273_v14 }
 0x45f   :  { %v1275_v15 = vpop.eup %1274 }
 0x460   :  { %v1277_v17 = vpop.eup %1276  ;;  %822 = vadd.xlane.f32.xlu1 %v1275_v15 }
 0x461   :  { %820 = vadd.xlane.f32.xlu0 %v1277_v17 }
 0x463   :  { %v1279_v18 = vpop.eup %1278 }
 0x464   :  { %v1281_v19 = vpop.eup %1280  ;;  %826 = vadd.xlane.f32.xlu1 %v1279_v18 }
 0x465   :  { %824 = vadd.xlane.f32.xlu0 %v1281_v19 }
 0x4cd   :  { %v799_v20 = vpop.xlane.xlu1 %798 }
 0x4ce   :  { %1282 = vlog2.f32 %v799_v20 }
 0x4d1   :  { %v803_v22 = vpop.xlane.xlu1 %802 }
 0x4d2   :  { %1284 = vlog2.f32 %v803_v22  ;;  %v797_v23 = vpop.xlane.xlu0 %796 }
 0x4d3   :  { %1286 = vlog2.f32 %v797_v23 }
 0x4d6   :  { %v801_v24 = vpop.xlane.xlu0 %800 }
 0x4d7   :  { %1288 = vlog2.f32 %v801_v24 }
 0x4d9   :  { %v807_v27 = vpop.xlane.xlu1 %806 }
 0x4da   :  { %1290 = vlog2.f32 %v807_v27  ;;  %v805_v28 = vpop.xlane.xlu0 %804 }
 0x4db   :  { %v1283_v29 = vpop.eup %1282  ;;  %1292 = vlog2.f32 %v805_v28 }
 0x4dc   :  { %v831_v30 = vmul.f32 0.6931472, %v1283_v29 }
 0x4dd   :  { %v811_v31 = vpop.xlane.xlu1 %810 }
 0x4de   :  { %v861_v62 = vsub.f32 %v1658_v21, %v831_v30  ;;  %1294 = vlog2.f32 %v811_v31  ;;  %v809_v0 = vpop.xlane.xlu0 %808 }
 0x4df   :  { %v1285_v1 = vpop.eup %1284  ;;  %1296 = vlog2.f32 %v809_v0 }
 0x4e0   :  { %v1287_v2 = vpop.eup %1286  ;;  %877 = vst [vmem:[%s1780_s6 + $0x8] sm:$0xff] %v861_v62  ;;  %v835_v4 = vmul.f32 0.6931472, %v1285_v1 }
 0x4e1   :  { %v829_v6 = vmul.f32 0.6931472, %v1287_v2  ;;  %v815_v7 = vpop.xlane.xlu1 %814 }
 0x4e2   :  { %v863_v8 = vsub.f32 %v1661_v25, %v835_v4  ;;  %1298 = vlog2.f32 %v815_v7  ;;  %v813_v9 = vpop.xlane.xlu0 %812 }
 0x4e3   :  { %v860_v11 = vsub.f32 %v1663_v26, %v829_v6  ;;  %1300 = vlog2.f32 %v813_v9 }
 0x4e4   :  { %v1289_v21 = vpop.eup %1288  ;;  %879 = vst [vmem:[%s1780_s6 + $0x18] sm:$0xff] %v863_v8 }
 0x4e5   :  { %876 = vst [vmem:[%s1780_s6] sm:$0xff] %v860_v11  ;;  %v833_v33 = vmul.f32 0.6931472, %v1289_v21  ;;  %v819_v34 = vpop.xlane.xlu1 %818 }
 0x4e6   :  { %1302 = vlog2.f32 %v819_v34  ;;  %v817_v35 = vpop.xlane.xlu0 %816 }
 0x4e7   :  { %v1291_v36 = vpop.eup %1290  ;;  %v862_v25 = vsub.f32 %v1667_v16, %v833_v33  ;;  %1304 = vlog2.f32 %v817_v35 }
 0x4e8   :  { %v1293_v37 = vpop.eup %1292  ;;  %v839_v26 = vmul.f32 0.6931472, %v1291_v36 }
 0x4e9   :  { %878 = vst [vmem:[%s1780_s6 + $0x10] sm:$0xff] %v862_v25  ;;  %v837_v39 = vmul.f32 0.6931472, %v1293_v37  ;;  %v823_v41 = vpop.xlane.xlu1 %822 }
 0x4ea   :  { %v865_v42 = vsub.f32 %v1672_v63, %v839_v26  ;;  %1306 = vlog2.f32 %v823_v41  ;;  %v821_v43 = vpop.xlane.xlu0 %820 }
 0x4eb   :  { %v1295_v44 = vpop.eup %1294  ;;  %v864_v46 = vsub.f32 %v1670_v61, %v837_v39  ;;  %1308 = vlog2.f32 %v821_v43 }
 0x4ec   :  { %v1297_v48 = vpop.eup %1296  ;;  %881 = vst [vmem:[%s1780_s6 + $0x28] sm:$0xff] %v865_v42  ;;  %v843_v16 = vmul.f32 0.6931472, %v1295_v44 }
 0x4ed   :  { %880 = vst [vmem:[%s1780_s6 + $0x20] sm:$0xff] %v864_v46  ;;  %v841_v49 = vmul.f32 0.6931472, %v1297_v48  ;;  %v827_v50 = vpop.xlane.xlu1 %826 }
 0x4ee   :  { %v867_v63 = vsub.f32 %v1678_v5, %v843_v16  ;;  %1310 = vlog2.f32 %v827_v50  ;;  %v825_v51 = vpop.xlane.xlu0 %824 }
 0x4ef   :  { %v1299_v52 = vpop.eup %1298  ;;  %v866_v61 = vsub.f32 %v1676_v3, %v841_v49  ;;  %1312 = vlog2.f32 %v825_v51 }
 0x4f0   :  { %v1301_v54 = vpop.eup %1300  ;;  %883 = vst [vmem:[%s1780_s6 + $0x38] sm:$0xff] %v867_v63  ;;  %v847_v56 = vmul.f32 0.6931472, %v1299_v52 }
 0x4f1   :  { %882 = vst [vmem:[%s1780_s6 + $0x30] sm:$0xff] %v866_v61  ;;  %v845_v57 = vmul.f32 0.6931472, %v1301_v54 }
 0x4f2   :  { %v869_v58 = vsub.f32 %v1684_v32, %v847_v56 }
 0x4f3   :  { %v1303_v5 = vpop.eup %1302  ;;  %v868_v59 = vsub.f32 %v1682_v10, %v845_v57 }
 0x4f4   :  { %v1305_v60 = vpop.eup %1304  ;;  %885 = vst [vmem:[%s1780_s6 + $0x48] sm:$0xff] %v869_v58  ;;  %v851_v3 = vmul.f32 0.6931472, %v1303_v5 }
 0x4f5   :  { %884 = vst [vmem:[%s1780_s6 + $0x40] sm:$0xff] %v868_v59  ;;  %v849_v12 = vmul.f32 0.6931472, %v1305_v60 }
 0x4f6   :  { %v871_v13 = vsub.f32 %v1690_v40, %v851_v3 }
 0x4f7   :  { %v1307_v14 = vpop.eup %1306  ;;  %v870_v15 = vsub.f32 %v1688_v38, %v849_v12 }
 0x4f8   :  { %v1309_v32 = vpop.eup %1308  ;;  %887 = vst [vmem:[%s1780_s6 + $0x58] sm:$0xff] %v871_v13  ;;  %v855_v10 = vmul.f32 0.6931472, %v1307_v14 }
 0x4f9   :  { %886 = vst [vmem:[%s1780_s6 + $0x50] sm:$0xff] %v870_v15  ;;  %v853_v17 = vmul.f32 0.6931472, %v1309_v32 }
 0x4fa   :  { %v873_v18 = vsub.f32 %v1698_v47, %v855_v10 }
 0x4fb   :  { %v1311_v19 = vpop.eup %1310  ;;  %v872_v20 = vsub.f32 %v1695_v45, %v853_v17 }
 0x4fc   :  { %v1313_v40 = vpop.eup %1312  ;;  %889 = vst [vmem:[%s1780_s6 + $0x68] sm:$0xff] %v873_v18  ;;  %v859_v38 = vmul.f32 0.6931472, %v1311_v19 }
 0x4fd   :  { %888 = vst [vmem:[%s1780_s6 + $0x60] sm:$0xff] %v872_v20  ;;  %v857_v22 = vmul.f32 0.6931472, %v1313_v40 }
 0x4fe   :  { %v875_v23 = vsub.f32 %v1706_v55, %v859_v38 }
 0x4ff   :  { %v874_v24 = vsub.f32 %v1703_v53, %v857_v22 }
 0x500   :  { %891 = vst [vmem:[%s1780_s6 + $0x78] sm:$0xff] %v875_v23 }
 0x501   :  { %890 = vst [vmem:[%s1780_s6 + $0x70] sm:$0xff] %v874_v24 }

</bundles_post_ra>
